<compile_context>
chip_gen: v7x
topology: tpu7x:2x2x1
jax: 0.10.0
libtpu: 0.0.40
codegen_flags: <defaults>
</compile_context>

<pallas_src>
import jax
import jax.numpy as jnp
from jax.experimental import pallas as pl
from jax.experimental.pallas import tpu as pltpu


def _conv1x1_kernel(x_ref, w_ref, o_ref):
    """One (batch-block, spatial-tile) step.

    x_ref: (Nb, Cin, TM)   input slab, spatial on the lane axis
    w_ref: (Cout, Cin)     1x1 conv weights
    o_ref: (Nb, Cout, TM)  output slab, lane-dense store
    """
    w = w_ref[...]                                   # (Cout, Cin)
    for n in range(x_ref.shape[0]):                  # static, small unroll
        acc = jnp.dot(w, x_ref[n], preferred_element_type=jnp.float32)
        o_ref[n] = acc.astype(o_ref.dtype)


# Conservative double-buffered VMEM budget for the in+out tiles.  12 MiB fits
# comfortably under every generation's scoped default (16 MiB v5e, 32 MiB
# v6e/v7x) and leaves headroom on v7x's 64 MiB physical VMEM.
_VMEM_BUDGET = 12 * 1024 * 1024


def _largest_tile(m, cap):
    """Largest multiple of 128 dividing m (a multiple of 128), <= max(cap,128)."""
    cap = max(128, cap)
    t = min(m, (cap // 128) * 128)
    while m % t != 0:
        t -= 128
    return t


def _plan_tiles(N, Cin, Cout, Mp, itemsize):
    """Pick (Nb, TM): batch block and lane-dense spatial tile."""
    # Double-buffered bytes per lane per batch element (input + output tiles).
    per_lane = 2 * (Cin + Cout) * itemsize
    tm_cap = max(128, _VMEM_BUDGET // per_lane)
    TM = _largest_tile(Mp, tm_cap)

    # Batch blocking only helps when the whole (padded) spatial axis fits one
    # tile; otherwise the spatial tiles are already large enough.
    Nb = 1
    if TM == Mp:
        max_nb = max(1, _VMEM_BUDGET // (per_lane * TM))
        for d in range(min(N, max_nb), 0, -1):
            if N % d == 0:
                Nb = d
                break

    # Keep >=2 grid blocks whenever possible so both v7x TensorCores get work
    # (costs nothing on single-TC v5e/v6e).
    if (N // Nb) * (Mp // TM) < 2:
        if Nb > 1:
            for d in range(Nb // 2, 0, -1):
                if N % d == 0:
                    Nb = d
                    break
        elif Mp >= 256:
            for t in range((TM // 2 // 128) * 128, 0, -128):
                if Mp % t == 0:
                    TM = t
                    break
    return Nb, TM


@jax.jit
def identity_forward(x_nchw, w_oihw):
    """Pallas forward of Identity: Conv2d(k=1, pad=0, bias=False). NCHW in/out."""
    N, Cin, H, W = x_nchw.shape
    Cout = w_oihw.shape[0]
    M = H * W

    # Common compute dtype (promote, never downcast the weights).
    dtype = jnp.promote_types(x_nchw.dtype, w_oihw.dtype)
    itemsize = jnp.dtype(dtype).itemsize

    # Contiguous reshape only — spatial on the lane axis; pad to a multiple of
    # 128 lanes so every tile is lane-dense (unmasked vst) and pipelined.
    Mp = ((M + 127) // 128) * 128
    x = x_nchw.reshape(N, Cin, M).astype(dtype)
    if Mp != M:
        x = jnp.pad(x, ((0, 0), (0, 0), (0, Mp - M)))
    w = w_oihw.reshape(Cout, Cin).astype(dtype)

    Nb, TM = _plan_tiles(N, Cin, Cout, Mp, itemsize)
    grid = (N // Nb, Mp // TM)

    # Actual double-buffered footprint (plus the resident weight tile).
    footprint = 2 * Nb * (Cin + Cout) * TM * itemsize + 2 * Cout * Cin * itemsize
    vmem_limit = min(48 << 20, max(16 << 20, footprint + (4 << 20)))

    out = pl.pallas_call(
        _conv1x1_kernel,
        out_shape=jax.ShapeDtypeStruct((N, Cout, Mp), dtype),
        grid_spec=pltpu.PrefetchScalarGridSpec(
            num_scalar_prefetch=0,
            grid=grid,
            in_specs=[
                pl.BlockSpec((Nb, Cin, TM), lambda n, m: (n, 0, m)),
                pl.BlockSpec((Cout, Cin), lambda n, m: (0, 0)),
            ],
            out_specs=pl.BlockSpec((Nb, Cout, TM), lambda n, m: (n, 0, m)),
        ),
        compiler_params=pltpu.CompilerParams(
            dimension_semantics=("parallel", "parallel"),
            vmem_limit_bytes=vmem_limit),
    )(x, w)

    if Mp != M:
        out = out[:, :, :M]
    return out.reshape(N, Cout, H, W)


def _reference_forward(x_nchw, w_oihw):
    """Pure-JAX reference: the same 1x1 conv via lax.conv."""
    return jax.lax.conv_general_dilated(
        x_nchw, w_oihw,
        window_strides=(1, 1), padding="VALID",
        dimension_numbers=("NCHW", "OIHW", "NCHW"))


if __name__ == "__main__":
    key = jax.random.PRNGKey(0)
    k_x, k_w, k_x2 = jax.random.split(key, 3)

    # Main case: shapes consistent with the module spec.
    N, Cin, Cout, H, W = 2, 4, 8, 16, 16
    x = jax.random.normal(k_x, (N, Cin, H, W), jnp.float32)
    w = jax.random.normal(k_w, (Cout, Cin, 1, 1), jnp.float32) * 0.1

    out = jax.block_until_ready(identity_forward(x, w))
    ref = _reference_forward(x, w)
    assert out.shape == (N, Cout, H, W)
    assert jnp.allclose(out, ref, atol=1e-4, rtol=1e-4)

    # Ragged spatial size (M = 100 -> padded to 128) exercises the padding path.
    x2 = jax.random.normal(k_x2, (1, Cin, 10, 10), jnp.float32)
    out2 = jax.block_until_ready(identity_forward(x2, w))
    ref2 = _reference_forward(x2, w)
    assert out2.shape == (1, Cout, 10, 10)
    assert jnp.allclose(out2, ref2, atol=1e-4, rtol=1e-4)

    print("KERNEL_OK")
</pallas_src>

<mosaic_0001>
module attributes {stable_mosaic.version = 11 : i64} {
  func.func @_conv1x1_kernel(%arg0: i32, %arg1: i32, %arg2: memref<1x4x256xf32, #tpu.memory_space<vmem>>, %arg3: memref<8x4xf32, #tpu.memory_space<vmem>>, %arg4: memref<1x8x256xf32, #tpu.memory_space<vmem>>) attributes {dimension_semantics = [#tpu.dimension_semantics<parallel>, #tpu.dimension_semantics<parallel>], iteration_bounds = array<i64: 2, 1>, scalar_prefetch = 0 : i64, scratch_operands = 0 : i64, tpu.core_type = #tpu.core_type<tc>, window_params = [{transform_indices = @transform_0, window_bounds = array<i64: 1, 4, 256>}, {pipeline_mode = #tpu.pipeline_mode<synchronous>, transform_indices = @transform_1, window_bounds = array<i64: 8, 4>}, {transform_indices = @transform_2, window_bounds = array<i64: 1, 8, 256>}]} {
    %c0 = arith.constant 0 : index
    %c0_0 = arith.constant 0 : index
    %0 = vector.load %arg3[%c0, %c0_0] : memref<8x4xf32, #tpu.memory_space<vmem>>, vector<8x4xf32>
    %c0_1 = arith.constant 0 : index
    %c0_2 = arith.constant 0 : index
    %c0_3 = arith.constant 0 : index
    %1 = vector.load %arg2[%c0_1, %c0_2, %c0_3] : memref<1x4x256xf32, #tpu.memory_space<vmem>>, vector<1x4x256xf32>
    %2 = vector.shape_cast %1 : vector<1x4x256xf32> to vector<4x256xf32>
    %cst = arith.constant dense<0.000000e+00> : vector<8x256xf32>
    %3 = tpu.matmul %0, %2, %cst {dimension_numbers = #tpu.dot_dimension_numbers<[1], [0], [0], [1], [0, 0, 1, 1], [], []>} : vector<8x4xf32>, vector<4x256xf32>, vector<8x256xf32> -> vector<8x256xf32>
    %c0_4 = arith.constant 0 : index
    %c0_5 = arith.constant 0 : index
    %c0_6 = arith.constant 0 : index
    %4 = vector.load %arg4[%c0_4, %c0_5, %c0_6] : memref<1x8x256xf32, #tpu.memory_space<vmem>>, vector<1x8x256xf32>
    %5 = vector.shape_cast %4 : vector<1x8x256xf32> to vector<8x256xf32>
    %6 = vector.shape_cast %3 : vector<8x256xf32> to vector<1x8x256xf32>
    tpu.vector_store %arg4[%c0_4, %c0_5, %c0_6], %6 {strides = array<i32>} : memref<1x8x256xf32, #tpu.memory_space<vmem>>, vector<1x8x256xf32>,
    return
  }
  func.func @transform_0(%arg0: i32, %arg1: i32) -> (i32, i32, i32) {
    %c0_i32 = arith.constant 0 : i32
    %c0_i32_0 = arith.constant 0 : i32
    return %arg0, %c0_i32, %arg1 : i32, i32, i32
  }
  func.func @transform_1(%arg0: i32, %arg1: i32) -> (i32, i32) {
    %c0_i32 = arith.constant 0 : i32
    %c0_i32_0 = arith.constant 0 : i32
    %c0_i32_1 = arith.constant 0 : i32
    return %c0_i32, %c0_i32_0 : i32, i32
  }
  func.func @transform_2(%arg0: i32, %arg1: i32) -> (i32, i32, i32) {
    %c0_i32 = arith.constant 0 : i32
    %c0_i32_0 = arith.constant 0 : i32
    return %arg0, %c0_i32, %arg1 : i32, i32, i32
  }
}

</mosaic_0001>

<bundles_post_ra>
// kernel: identity_forward.1
= control target key start
LH: loop header
LB: loop body
LE: loop exit
PB: predicated region body
PF: predicated region fallthrough
CT: control target
= control target key end

     0   :  { %s438_s9 = smov 0   ;;  %s440_s10 = smov 0   ;;  %s471_s0 = inlined_call_operand.vmem [shape: f32[2,4,256], index: 0, kind: input, shape index: {}]   ;;  %s472_s1 = inlined_call_operand.vmem [shape: f32[8,4], index: 1, kind: input, shape index: {}]   ;;  %s473_s2 = inlined_call_operand.vmem [shape: f32[2,8,256], index: 2, kind: output, shape index: {}]  }
   0x1   :  { %s442_s11 = smov 0  }
   0x2 LB: > { %s24_s12 = sadd.s32 1, %s416_s10  ;;  %p360_p0 = scmp.ge.s32.totalorder %s420_s11, 1  ;;  %s420_s11 = sphi %s442_s11, %s12_s11   ;;  %s416_s10 = sphi %s440_s10, %s475_s10   ;;  %s412_s9 = sphi %s438_s9, %s474_s9  }
   0x3   : > { %p26_p1 = scmp.ge.s32.totalorder %s24_s12, 2  ;;  %p133_p2 = scmp.lt.s32.totalorder %s420_s11, 3 }
   0x5   : > { %s477_s12 = smov (%p26_p1, %s24_s12), 0  ;;  %p134_p3 = pnand %p360_p0, %p133_p2 }
   0x6   : > { %p164_p4 = scmp.lt.s32.totalorder (!%p134_p3), %s412_s9, 1  ;;  %v422_v0 = vmov (!%p134_p3), 0.0   ;;  %vm191_vm0 = vcmask (!%p134_p3), 1043456   ;;  %v183_v3 = vld [vmem:[%s472_s1] sm:$0xff] (!%p134_p3)  ;;  %vm187_vm1 = vcmask (!%p134_p3), 31744  }
   0x7   : > { %137 = sbr.rel (%p134_p3) target bundleno = 236 (0xec), region = 28  ;;  %260 = vmatprep.mubr.f32.mxu0 (!%p134_p3), %v422_v0 }
   0xe   : > { %s479_s9 = smov (!%p164_p4, %s412_s9), 1 }
   0xf   : > { %s370_s13 = sshll.u32 %s479_s9, 3  ;;  %s371_s19 = sshll.u32 %s479_s9, 4 }
  0x10   : > { %s171_s16 = scalar_lea.vmem %s471_s0, %s370_s13  ;;  %s181_s22 = scalar_lea.vmem %s473_s2, %s371_s19 }
  0x11   : > { %v184_v1 = vld [vmem:[%s171_s16] sm:$0xff] }
  0x12   : > { %v186_v2 = vcombine.high %v184_v1, %v184_v1 }
  0x14   : > { %365 = vmatprep.subr.msk.mxu0 %vm191_vm0, %v186_v2 }
  0x15   : > { %366 = vmatpush1.msk.msra.mxu0 %vm191_vm0, %v184_v1 }
  0x16   : > { %367 = vmatmul.mubr.msk.f32.vlgmr.msra.gmra.mrb[0].mxu0 %vm187_vm1, %v183_v3 }
  0xe9   : > { %v262_v4 = vpop.f32.mrb[0].mxu0 }
  0xea   : > { %267 = vst [vmem:[%s181_s22] sm:$0xff] %v262_v4  ;;  %v264_v5 = vpop.f32.mrb[1].mxu0 }
  0xeb   : > { %268 = vst [vmem:[%s181_s22 + $0x8] sm:$0xff] %v264_v5 }
  0xec PF: > { %s12_s11 = sadd.s32 1, %s420_s11   ;;  %s474_s9 = smov %s416_s10 }
  0xed   : > { %p9_p5 = scmp.ge.s32.totalorder %s12_s11, 4   ;;  %s475_s10 = smov %s477_s12 }
  0xef   :  { %11 = sbr.rel (!%p9_p5) target bundleno = 2 (0x2), region = 58 }

</bundles_post_ra>
